<compile_context>
chip_gen: v7x
topology: tpu7x:2x2x1
jax: 0.10.0
libtpu: 0.0.40
codegen_flags: <defaults>
</compile_context>

<pallas_src>
import jax
import jax.numpy as jnp
from jax.experimental import pallas as pl
from jax.experimental.pallas import tpu as pltpu

HIDDEN_DIM = 20
LATENT_DIM = 10


def _vae_kernel(x_ref, eps_ref,
                w_in_ref, w_hh_ref, w_mv_ref, w_h_ref, w_out_ref,
                b_ref,
                xhat_ref, mv_ref):
    H = HIDDEN_DIM
    L = LATENT_DIM

    x = x_ref[...]

    # Packed biases: row 0 b_in, 1 b_in2, 2 b_meanvar, 3 b_h, 4 b_h2, 5 b_out
    b_in = b_ref[0:1, :H]
    b_in2 = b_ref[1:2, :H]
    b_mv = b_ref[2:3, :2 * L]
    b_h = b_ref[3:4, :H]
    b_h2 = b_ref[4:5, :H]
    b_out = b_ref[5:6, :xhat_ref.shape[1]]

    # ---- Encoder ----
    h = jnp.tanh(jnp.dot(x, w_in_ref[...],
                         preferred_element_type=jnp.float32) + b_in)
    h = jnp.tanh(jnp.dot(h, w_hh_ref[0],
                         preferred_element_type=jnp.float32) + b_in2)
    # Fused mean / log_var head: one (H, 2L) matmul.
    mv = jnp.dot(h, w_mv_ref[...],
                 preferred_element_type=jnp.float32) + b_mv
    mean = mv[:, :L]
    log_var = mv[:, L:]

    # ---- Reparameterization: z = mean + exp(0.5*log_var) * eps ----
    std = jnp.exp(0.5 * log_var)
    z = mean + std * eps_ref[...]

    # ---- Decoder ----
    d = jnp.tanh(jnp.dot(z, w_h_ref[...],
                         preferred_element_type=jnp.float32) + b_h)
    d = jnp.tanh(jnp.dot(d, w_hh_ref[1],
                         preferred_element_type=jnp.float32) + b_h2)
    x_hat = jnp.dot(d, w_out_ref[...],
                    preferred_element_type=jnp.float32) + b_out

    xhat_ref[...] = x_hat
    mv_ref[...] = mv      # (mean | log_var) packed; split in the wrapper


def _pick_batch_tile(B):
    for tb in (512, 256, 128, 64, 32, 16, 8):
        if B % tb == 0:
            return tb
    return B  # full-array block is always a legal block shape


def pack_params(params, input_dim):
    """Convert per-layer params into the consolidated kernel layout."""
    H, L = HIDDEN_DIM, LATENT_DIM
    maxw = max(H, 2 * L, input_dim)

    def pad_bias(b):
        b = b.reshape(1, -1)
        return jnp.pad(b, ((0, 0), (0, maxw - b.shape[1])))

    b_all = jnp.concatenate([
        pad_bias(params["b_in"]),
        pad_bias(params["b_in2"]),
        pad_bias(jnp.concatenate([params["b_mean"].reshape(1, -1),
                                  params["b_var"].reshape(1, -1)], axis=1)),
        pad_bias(params["b_h"]),
        pad_bias(params["b_h2"]),
        pad_bias(params["b_out"]),
    ], axis=0)                                           # (6, maxw)

    return {
        "w_in": params["w_in"],                                          # (in, H)
        "w_hh": jnp.stack([params["w_in2"], params["w_h2"]], axis=0),    # (2, H, H)
        "w_mv": jnp.concatenate([params["w_mean"], params["w_var"]], 1), # (H, 2L)
        "w_h": params["w_h"],                                            # (L, H)
        "w_out": params["w_out"],                                        # (H, in)
        "b_all": b_all,                                                  # (6, maxw)
    }


def vae_forward(x, eps, packed):
    """Fused VAE forward.  Returns (x_hat, mean, log_var)."""
    B, input_dim = x.shape
    H, L = HIDDEN_DIM, LATENT_DIM
    maxw = packed["b_all"].shape[1]
    TB = _pick_batch_tile(B)
    grid = (B // TB,) if B % TB == 0 else (1,)

    # Cost hint so XLA schedules neighbours around this tiny call.
    flops = 2 * B * (input_dim * H + H * H + H * 2 * L
                     + L * H + H * H + H * input_dim)
    transcendentals = B * (4 * H + L)      # 4 tanh layers + exp
    bytes_accessed = 4 * (
        x.size + eps.size
        + sum(int(v.size) for v in packed.values())
        + B * input_dim + B * 2 * L)
    cost = pl.CostEstimate(flops=flops,
                           transcendentals=transcendentals,
                           bytes_accessed=bytes_accessed)

    const = lambda i: (0, 0)
    grid_spec = pltpu.PrefetchScalarGridSpec(
        num_scalar_prefetch=0,
        grid=grid,
        in_specs=[
            pl.BlockSpec((TB, input_dim), lambda i: (i, 0)),   # x
            pl.BlockSpec((TB, L), lambda i: (i, 0)),           # eps
            pl.BlockSpec((input_dim, H), const),               # w_in
            pl.BlockSpec((2, H, H), lambda i: (0, 0, 0)),      # w_in2 | w_h2
            pl.BlockSpec((H, 2 * L), const),                   # w_mean|w_var
            pl.BlockSpec((L, H), const),                       # w_h
            pl.BlockSpec((H, input_dim), const),               # w_out
            pl.BlockSpec((6, maxw), const),                    # packed biases
        ],
        out_specs=[
            pl.BlockSpec((TB, input_dim), lambda i: (i, 0)),   # x_hat
            pl.BlockSpec((TB, 2 * L), lambda i: (i, 0)),       # mean|log_var
        ],
    )

    x_hat, mv = pl.pallas_call(
        _vae_kernel,
        out_shape=(
            jax.ShapeDtypeStruct((B, input_dim), jnp.float32),
            jax.ShapeDtypeStruct((B, 2 * L), jnp.float32),
        ),
        grid_spec=grid_spec,
        compiler_params=pltpu.CompilerParams(
            dimension_semantics=("parallel",)),
        cost_estimate=cost,
    )(x, eps, packed["w_in"], packed["w_hh"], packed["w_mv"],
      packed["w_h"], packed["w_out"], packed["b_all"])

    mean, log_var = mv[:, :L], mv[:, L:]
    return x_hat, mean, log_var


def init_params(key, input_dim, hidden_dim=HIDDEN_DIM, latent_dim=LATENT_DIM):
    """Deterministic synthetic parameters (shapes match the nn.Linear layers)."""
    keys = jax.random.split(key, 7)

    def lin(k, fan_in, fan_out):
        bound = 1.0 / jnp.sqrt(fan_in)
        kw, kb = jax.random.split(k)
        w = jax.random.uniform(kw, (fan_in, fan_out), jnp.float32, -bound, bound)
        b = jax.random.uniform(kb, (1, fan_out), jnp.float32, -bound, bound)
        return w, b

    params = {}
    params["w_in"], params["b_in"] = lin(keys[0], input_dim, hidden_dim)
    params["w_in2"], params["b_in2"] = lin(keys[1], hidden_dim, hidden_dim)
    params["w_mean"], params["b_mean"] = lin(keys[2], hidden_dim, latent_dim)
    params["w_var"], params["b_var"] = lin(keys[3], hidden_dim, latent_dim)
    params["w_h"], params["b_h"] = lin(keys[4], latent_dim, hidden_dim)
    params["w_h2"], params["b_h2"] = lin(keys[5], hidden_dim, hidden_dim)
    params["w_out"], params["b_out"] = lin(keys[6], hidden_dim, input_dim)
    return params


def vae_forward_ref(x, eps, params):
    """Pure-JAX reference of the same forward pass."""
    h = jnp.tanh(x @ params["w_in"] + params["b_in"])
    h = jnp.tanh(h @ params["w_in2"] + params["b_in2"])
    mean = h @ params["w_mean"] + params["b_mean"]
    log_var = h @ params["w_var"] + params["b_var"]
    z = mean + jnp.exp(0.5 * log_var) * eps
    d = jnp.tanh(z @ params["w_h"] + params["b_h"])
    d = jnp.tanh(d @ params["w_h2"] + params["b_h2"])
    x_hat = d @ params["w_out"] + params["b_out"]
    return x_hat, mean, log_var


if __name__ == "__main__":
    key = jax.random.PRNGKey(0)
    k_param, k_x, k_eps = jax.random.split(key, 3)

    batch = 8
    input_dim = 32  # flattened small feature vector

    params = init_params(k_param, input_dim)
    packed = pack_params(params, input_dim)

    x = jax.random.normal(k_x, (batch, input_dim), dtype=jnp.float32)
    # torch.randn_like(std) equivalent, generated outside the kernel.
    eps = jax.random.normal(k_eps, (batch, LATENT_DIM), dtype=jnp.float32)

    x_hat, mean, log_var = vae_forward(x, eps, packed)
    jax.block_until_ready((x_hat, mean, log_var))

    # correctness check against pure-JAX reference
    x_hat_r, mean_r, log_var_r = vae_forward_ref(x, eps, params)
    assert jnp.allclose(x_hat, x_hat_r, atol=2e-5, rtol=2e-5)
    assert jnp.allclose(mean, mean_r, atol=2e-5, rtol=2e-5)
    assert jnp.allclose(log_var, log_var_r, atol=2e-5, rtol=2e-5)

    print("KERNEL_OK")
</pallas_src>

<mosaic_0001>
module attributes {stable_mosaic.version = 11 : i64} {
  func.func @_vae_kernel(%arg0: i32, %arg1: memref<8x32xf32, #tpu.memory_space<vmem>>, %arg2: memref<8x10xf32, #tpu.memory_space<vmem>>, %arg3: memref<32x20xf32, #tpu.memory_space<vmem>>, %arg4: memref<2x20x20xf32, #tpu.memory_space<vmem>>, %arg5: memref<20x20xf32, #tpu.memory_space<vmem>>, %arg6: memref<10x20xf32, #tpu.memory_space<vmem>>, %arg7: memref<20x32xf32, #tpu.memory_space<vmem>>, %arg8: memref<6x32xf32, #tpu.memory_space<vmem>>, %arg9: memref<8x32xf32, #tpu.memory_space<vmem>>, %arg10: memref<8x20xf32, #tpu.memory_space<vmem>>) attributes {dimension_semantics = [#tpu.dimension_semantics<parallel>], iteration_bounds = array<i64: 1>, scalar_prefetch = 0 : i64, scratch_operands = 0 : i64, tpu.core_type = #tpu.core_type<tc>, window_params = [{transform_indices = @transform_0, window_bounds = array<i64: 8, 32>}, {transform_indices = @transform_1, window_bounds = array<i64: 8, 10>}, {pipeline_mode = #tpu.pipeline_mode<synchronous>, transform_indices = @transform_2, window_bounds = array<i64: 32, 20>}, {pipeline_mode = #tpu.pipeline_mode<synchronous>, transform_indices = @transform_3, window_bounds = array<i64: 2, 20, 20>}, {pipeline_mode = #tpu.pipeline_mode<synchronous>, transform_indices = @transform_4, window_bounds = array<i64: 20, 20>}, {pipeline_mode = #tpu.pipeline_mode<synchronous>, transform_indices = @transform_5, window_bounds = array<i64: 10, 20>}, {pipeline_mode = #tpu.pipeline_mode<synchronous>, transform_indices = @transform_6, window_bounds = array<i64: 20, 32>}, {pipeline_mode = #tpu.pipeline_mode<synchronous>, transform_indices = @transform_7, window_bounds = array<i64: 6, 32>}, {transform_indices = @transform_8, window_bounds = array<i64: 8, 32>}, {transform_indices = @transform_9, window_bounds = array<i64: 8, 20>}]} {
    %c0 = arith.constant 0 : index
    %c0_0 = arith.constant 0 : index
    %0 = vector.load %arg1[%c0, %c0_0] : memref<8x32xf32, #tpu.memory_space<vmem>>, vector<8x32xf32>
    %c0_1 = arith.constant 0 : index
    %c0_2 = arith.constant 0 : index
    %1 = vector.load %arg8[%c0_1, %c0_2] : memref<6x32xf32, #tpu.memory_space<vmem>>, vector<1x20xf32>
    %c1 = arith.constant 1 : index
    %c0_3 = arith.constant 0 : index
    %2 = vector.load %arg8[%c1, %c0_3] : memref<6x32xf32, #tpu.memory_space<vmem>>, vector<1x20xf32>
    %c2 = arith.constant 2 : index
    %c0_4 = arith.constant 0 : index
    %3 = vector.load %arg8[%c2, %c0_4] : memref<6x32xf32, #tpu.memory_space<vmem>>, vector<1x20xf32>
    %c3 = arith.constant 3 : index
    %c0_5 = arith.constant 0 : index
    %4 = vector.load %arg8[%c3, %c0_5] : memref<6x32xf32, #tpu.memory_space<vmem>>, vector<1x20xf32>
    %c4 = arith.constant 4 : index
    %c0_6 = arith.constant 0 : index
    %5 = vector.load %arg8[%c4, %c0_6] : memref<6x32xf32, #tpu.memory_space<vmem>>, vector<1x20xf32>
    %c5 = arith.constant 5 : index
    %c0_7 = arith.constant 0 : index
    %6 = vector.load %arg8[%c5, %c0_7] : memref<6x32xf32, #tpu.memory_space<vmem>>, vector<1x32xf32>
    %c0_8 = arith.constant 0 : index
    %c0_9 = arith.constant 0 : index
    %7 = vector.load %arg3[%c0_8, %c0_9] : memref<32x20xf32, #tpu.memory_space<vmem>>, vector<32x20xf32>
    %cst = arith.constant dense<0.000000e+00> : vector<8x20xf32>
    %8 = tpu.matmul %0, %7, %cst {dimension_numbers = #tpu.dot_dimension_numbers<[1], [0], [0], [1], [0, 0, 1, 1], [], []>} : vector<8x32xf32>, vector<32x20xf32>, vector<8x20xf32> -> vector<8x20xf32>
    %9 = vector.broadcast %1 : vector<1x20xf32> to vector<8x20xf32>
    %10 = arith.addf %8, %9 : vector<8x20xf32>
    %11 = math.tanh %10 : vector<8x20xf32>
    %c0_10 = arith.constant 0 : index
    %c0_11 = arith.constant 0 : index
    %c0_12 = arith.constant 0 : index
    %12 = vector.load %arg4[%c0_10, %c0_11, %c0_12] : memref<2x20x20xf32, #tpu.memory_space<vmem>>, vector<1x20x20xf32>
    %13 = vector.shape_cast %12 : vector<1x20x20xf32> to vector<20x20xf32>
    %cst_13 = arith.constant dense<0.000000e+00> : vector<8x20xf32>
    %14 = tpu.matmul %11, %13, %cst_13 {dimension_numbers = #tpu.dot_dimension_numbers<[1], [0], [0], [1], [0, 0, 1, 1], [], []>} : vector<8x20xf32>, vector<20x20xf32>, vector<8x20xf32> -> vector<8x20xf32>
    %15 = vector.broadcast %2 : vector<1x20xf32> to vector<8x20xf32>
    %16 = arith.addf %14, %15 : vector<8x20xf32>
    %17 = math.tanh %16 : vector<8x20xf32>
    %c0_14 = arith.constant 0 : index
    %c0_15 = arith.constant 0 : index
    %18 = vector.load %arg5[%c0_14, %c0_15] : memref<20x20xf32, #tpu.memory_space<vmem>>, vector<20x20xf32>
    %cst_16 = arith.constant dense<0.000000e+00> : vector<8x20xf32>
    %19 = tpu.matmul %17, %18, %cst_16 {dimension_numbers = #tpu.dot_dimension_numbers<[1], [0], [0], [1], [0, 0, 1, 1], [], []>} : vector<8x20xf32>, vector<20x20xf32>, vector<8x20xf32> -> vector<8x20xf32>
    %20 = vector.broadcast %3 : vector<1x20xf32> to vector<8x20xf32>
    %21 = arith.addf %19, %20 : vector<8x20xf32>
    %22 = vector.extract_strided_slice %21 {offsets = [0, 0], sizes = [8, 10], strides = [1, 1]} : vector<8x20xf32> to vector<8x10xf32>
    %23 = vector.extract_strided_slice %21 {offsets = [0, 10], sizes = [8, 10], strides = [1, 1]} : vector<8x20xf32> to vector<8x10xf32>
    %cst_17 = arith.constant 5.000000e-01 : f32
    %24 = vector.broadcast %cst_17 : f32 to vector<8x10xf32>
    %25 = arith.mulf %24, %23 : vector<8x10xf32>
    %26 = math.exp %25 : vector<8x10xf32>
    %c0_18 = arith.constant 0 : index
    %c0_19 = arith.constant 0 : index
    %27 = vector.load %arg2[%c0_18, %c0_19] : memref<8x10xf32, #tpu.memory_space<vmem>>, vector<8x10xf32>
    %28 = arith.mulf %26, %27 : vector<8x10xf32>
    %29 = arith.addf %22, %28 : vector<8x10xf32>
    %c0_20 = arith.constant 0 : index
    %c0_21 = arith.constant 0 : index
    %30 = vector.load %arg6[%c0_20, %c0_21] : memref<10x20xf32, #tpu.memory_space<vmem>>, vector<10x20xf32>
    %cst_22 = arith.constant dense<0.000000e+00> : vector<8x20xf32>
    %31 = tpu.matmul %29, %30, %cst_22 {dimension_numbers = #tpu.dot_dimension_numbers<[1], [0], [0], [1], [0, 0, 1, 1], [], []>} : vector<8x10xf32>, vector<10x20xf32>, vector<8x20xf32> -> vector<8x20xf32>
    %32 = vector.broadcast %4 : vector<1x20xf32> to vector<8x20xf32>
    %33 = arith.addf %31, %32 : vector<8x20xf32>
    %34 = math.tanh %33 : vector<8x20xf32>
    %c1_23 = arith.constant 1 : index
    %c0_24 = arith.constant 0 : index
    %c0_25 = arith.constant 0 : index
    %35 = vector.load %arg4[%c1_23, %c0_24, %c0_25] : memref<2x20x20xf32, #tpu.memory_space<vmem>>, vector<1x20x20xf32>
    %36 = vector.shape_cast %35 : vector<1x20x20xf32> to vector<20x20xf32>
    %cst_26 = arith.constant dense<0.000000e+00> : vector<8x20xf32>
    %37 = tpu.matmul %34, %36, %cst_26 {dimension_numbers = #tpu.dot_dimension_numbers<[1], [0], [0], [1], [0, 0, 1, 1], [], []>} : vector<8x20xf32>, vector<20x20xf32>, vector<8x20xf32> -> vector<8x20xf32>
    %38 = vector.broadcast %5 : vector<1x20xf32> to vector<8x20xf32>
    %39 = arith.addf %37, %38 : vector<8x20xf32>
    %40 = math.tanh %39 : vector<8x20xf32>
    %c0_27 = arith.constant 0 : index
    %c0_28 = arith.constant 0 : index
    %41 = vector.load %arg7[%c0_27, %c0_28] : memref<20x32xf32, #tpu.memory_space<vmem>>, vector<20x32xf32>
    %cst_29 = arith.constant dense<0.000000e+00> : vector<8x32xf32>
    %42 = tpu.matmul %40, %41, %cst_29 {dimension_numbers = #tpu.dot_dimension_numbers<[1], [0], [0], [1], [0, 0, 1, 1], [], []>} : vector<8x20xf32>, vector<20x32xf32>, vector<8x32xf32> -> vector<8x32xf32>
    %43 = vector.broadcast %6 : vector<1x32xf32> to vector<8x32xf32>
    %44 = arith.addf %42, %43 : vector<8x32xf32>
    %c0_30 = arith.constant 0 : index
    %c0_31 = arith.constant 0 : index
    %45 = vector.load %arg9[%c0_30, %c0_31] : memref<8x32xf32, #tpu.memory_space<vmem>>, vector<8x32xf32>
    tpu.vector_store %arg9[%c0_30, %c0_31], %44 {strides = array<i32>} : memref<8x32xf32, #tpu.memory_space<vmem>>, vector<8x32xf32>,
    %c0_32 = arith.constant 0 : index
    %c0_33 = arith.constant 0 : index
    %46 = vector.load %arg10[%c0_32, %c0_33] : memref<8x20xf32, #tpu.memory_space<vmem>>, vector<8x20xf32>
    tpu.vector_store %arg10[%c0_32, %c0_33], %21 {strides = array<i32>} : memref<8x20xf32, #tpu.memory_space<vmem>>, vector<8x20xf32>,
    return
  }
  func.func @transform_0(%arg0: i32) -> (i32, i32) {
    %c0_i32 = arith.constant 0 : i32
    %c0_i32_0 = arith.constant 0 : i32
    return %arg0, %c0_i32 : i32, i32
  }
  func.func @transform_1(%arg0: i32) -> (i32, i32) {
    %c0_i32 = arith.constant 0 : i32
    %c0_i32_0 = arith.constant 0 : i32
    return %arg0, %c0_i32 : i32, i32
  }
  func.func @transform_2(%arg0: i32) -> (i32, i32) {
    %c0_i32 = arith.constant 0 : i32
    %c0_i32_0 = arith.constant 0 : i32
    %c0_i32_1 = arith.constant 0 : i32
    return %c0_i32, %c0_i32_0 : i32, i32
  }
  func.func @transform_3(%arg0: i32) -> (i32, i32, i32) {
    %c0_i32 = arith.constant 0 : i32
    %c0_i32_0 = arith.constant 0 : i32
    %c0_i32_1 = arith.constant 0 : i32
    %c0_i32_2 = arith.constant 0 : i32
    return %c0_i32, %c0_i32_0, %c0_i32_1 : i32, i32, i32
  }
  func.func @transform_4(%arg0: i32) -> (i32, i32) {
    %c0_i32 = arith.constant 0 : i32
    %c0_i32_0 = arith.constant 0 : i32
    %c0_i32_1 = arith.constant 0 : i32
    return %c0_i32, %c0_i32_0 : i32, i32
  }
  func.func @transform_5(%arg0: i32) -> (i32, i32) {
    %c0_i32 = arith.constant 0 : i32
    %c0_i32_0 = arith.constant 0 : i32
    %c0_i32_1 = arith.constant 0 : i32
    return %c0_i32, %c0_i32_0 : i32, i32
  }
  func.func @transform_6(%arg0: i32) -> (i32, i32) {
    %c0_i32 = arith.constant 0 : i32
    %c0_i32_0 = arith.constant 0 : i32
    %c0_i32_1 = arith.constant 0 : i32
    return %c0_i32, %c0_i32_0 : i32, i32
  }
  func.func @transform_7(%arg0: i32) -> (i32, i32) {
    %c0_i32 = arith.constant 0 : i32
    %c0_i32_0 = arith.constant 0 : i32
    %c0_i32_1 = arith.constant 0 : i32
    return %c0_i32, %c0_i32_0 : i32, i32
  }
  func.func @transform_8(%arg0: i32) -> (i32, i32) {
    %c0_i32 = arith.constant 0 : i32
    %c0_i32_0 = arith.constant 0 : i32
    return %arg0, %c0_i32 : i32, i32
  }
  func.func @transform_9(%arg0: i32) -> (i32, i32) {
    %c0_i32 = arith.constant 0 : i32
    %c0_i32_0 = arith.constant 0 : i32
    return %arg0, %c0_i32 : i32, i32
  }
}

</mosaic_0001>

<bundles_post_ra>
// kernel: tpu_custom_call.1
= control target key start
LH: loop header
LB: loop body
LE: loop exit
PB: predicated region body
PF: predicated region fallthrough
CT: control target
= control target key end

     0   :  { %15 = vsyncpa [#allocation3], 0  ;;  %v775_v3 = vmov 0.0|0.0   ;;  %vm776_vm0 = vmmov 0   ;;  %v777_v6 = vmov 0.0   ;;  %s969_s0 = inlined_call_operand.vmem [shape: f32[8,32], index: 0, kind: input, shape index: {}]   ;;  %s970_s1 = inlined_call_operand.vmem [shape: f32[8,10], index: 1, kind: input, shape index: {}]   ;;  %s971_s2 = inlined_call_operand.vmem [shape: f32[32,20], index: 2, kind: input, shape index: {}]   ;;  %s972_s3 = inlined_call_operand.vmem [shape: f32[2,20,20], index: 3, kind: input, shape index: {}]   ;;  %s973_s4 = inlined_call_operand.vmem [shape: f32[20,20], index: 4, kind: input, shape index: {}]   ;;  %s974_s5 = inlined_call_operand.vmem [shape: f32[10,20], index: 5, kind: input, shape index: {}]   ;;  %s975_s6 = inlined_call_operand.vmem [shape: f32[20,32], index: 6, kind: input, shape index: {}]   ;;  %s976_s7 = inlined_call_operand.vmem [shape: f32[6,32], index: 7, kind: input, shape index: {}]   ;;  %s977_s8 = inlined_call_operand.hbm [shape: f32[8,32], index: 8, kind: output, shape index: {0}]   ;;  %s978_s9 = inlined_call_operand.hbm [shape: f32[8,20], index: 9, kind: output, shape index: {1}]  }
   0x1   :  { %v40_v0 = vld [vmem:[%s971_s2] sm:$0xff]  ;;  %v41_v1 = vld [vmem:[%s971_s2 + $0x8] sm:$0xff]  ;;  %v42_v2 = vld [vmem:[%s971_s2 + $0x10] sm:$0xff]  ;;  %687 = vmatprep.subr.bf16.mxu0 %v775_v3  ;;  %641 = vmatprep.mubr.msk.f32.mxu0 %vm776_vm0, %v777_v6 }
   0x2   :  { %v688_v4 = vpack.c.bf16 %v41_v1, %v40_v0  ;;  %v43_v5 = vld [vmem:[%s971_s2 + $0x18] sm:$0xff]  ;;  %693 = vmatprep.subr.bf16.mxu1 %v775_v3  ;;  %650 = vmatprep.mubr.msk.f32.mxu1 %vm776_vm0, %v777_v6 }
   0x3   :  { %16 = vsyncpa [#allocation5], 0  ;;  %v691_v7 = vpack.c.bf16 %v43_v5, %v42_v2  ;;  %v33_v8 = vld [vmem:[%s969_s0] sm:$0xff]  ;;  %vm48_vm1 = vcmask 261120   ;;  %v124_v10 = vld [vmem:[%s972_s3 + $0x8] sm:$0xff]  ;;  %vm134_vm2 = vcmask 1043456  }
   0x4   :  { %689 = vmatpush3.bf16.msra.mxu0 %v688_v4  ;;  %v123_v9 = vld [vmem:[%s972_s3] sm:$0xff]  ;;  %v125_v12 = vld [vmem:[%s972_s3 + $0x10] sm:$0xf]  ;;  %vm130_vm3 = vcmask 162816   ;;  %v210_v19 = vld [vmem:[%s973_s4 + $0x8] sm:$0xff]  ;;  %s778_s12 = smov 10  }
   0x5   :  { %690 = vmatprep.subr.bf16.mxu0 %v775_v3  ;;  %v694_v11 = vpack.c.bf16 %v124_v10, %v123_v9  ;;  %v589_v13 = vld [vmem:[%s976_s7] ss:$0 sm:$0xff]  ;;  %v211_v21 = vld [vmem:[%s973_s4 + $0x10] sm:$0xf]  ;;  %v591_v23 = vld [vmem:[%s976_s7 + $0x1] ss:$0 sm:$0xff] }
   0x6   :  { %v209_v18 = vld [vmem:[%s973_s4] sm:$0xff]  ;;  %v307_v29 = vld [vmem:[%s974_s5 + $0x8] sm:$0x3]  ;;  %vm316_vm4 = vcmask 1041408   ;;  %vm779_vm5 = vmmov 1   ;;  %vm312_vm7 = vcmask 80896  }
   0x7   :  { %695 = vmatpush3.bf16.msra.mxu1 %v694_v11  ;;  %v697_v20 = vpack.c.bf16 %v210_v19, %v209_v18  ;;  %v295_v22 = vld [vmem:[%s970_s1] sm:$0xff]  ;;  %vm701_vm6 = vmpackc.low %vm316_vm4, %vm779_vm5  ;;  %v600_v42 = vld [vmem:[%s972_s3 + $0x18] sm:$0xff]  ;;  %s781_s11 = smov [#allocation4]  }
   0x8   :  { %692 = vmatpush3.bf16.msra.mxu0 %v691_v7  ;;  %648 = vmatprep.subr.mxu1 %v777_v6  ;;  %v306_v28 = vld [vmem:[%s974_s5] sm:$0xff]  ;;  %s780_s5 = smov 118   ;;  %v602_v45 = vld [vmem:[%s972_s3 + $0x28] sm:$0xf]  ;;  %v478_v54 = vld [vmem:[%s975_s6 + $0x10] sm:$0xf] }
   0x9   :  { %699 = vmatprep.subr.bf16.mxu0 %v775_v3  ;;  %297 = vrot.lane.b32.xlu0 %v295_v22, %s778_s12  ;;  %v700_v30 = vpack.c.bf16 %v307_v29, %v306_v28  ;;  %v594_v31 = vld [vmem:[%s976_s7 + $0x2] ss:$0 sm:$0xff]  ;;  %v597_v46 = vld [vmem:[%s976_s7 + $0x3] ss:$0 sm:$0xff]  ;;  %v477_v52 = vld [vmem:[%s975_s6 + $0x8] sm:$0xff]  ;;  %s577_s12 = sshll.u32 %s781_s11, 4  ;;  %s578_s12 = int_to_ptr.vmem [resolvable:$true] %s577_s12 }
   0xa   :  { %v601_v43 = vld [vmem:[%s972_s3 + $0x20] sm:$0xff]  ;;  %s727_s13 = scalar_lea.vmem %s578_s12, 128  ;;  %p732_p1 = scmp.lt.s32.totalorder %s578_s12, %s578_s12 }
   0xb   :  { %642 = vmatmul.mubr.msk.f32.vlgmr.msra.gmra.mrb[0].mxu0 %vm48_vm1, %v33_v8  ;;  %649 = vmatpush3.msk.msra.mxu1 %vm134_vm2, %v125_v12  ;;  %v704_v44 = vpack.c.bf16 %v601_v43, %v600_v42  ;;  %v476_v51 = vld [vmem:[%s975_s6] sm:$0xff]  ;;  %p728_p0 = scmp.ne.s32.totalorder %s578_s12, %s727_s13  ;;  %p733_p2 = scmp.lt.s32.totalorder %s727_s13, %s727_s13 }
   0xc   :  { %666 = vmatprep.mubr.msk.f32.mxu0 %vm776_vm0, %v777_v6  ;;  %696 = vmatprep.subr.bf16.mxu1 %v775_v3  ;;  %v707_v53 = vpack.c.bf16 %v477_v52, %v476_v51  ;;  %v603_v55 = vld [vmem:[%s976_s7 + $0x4] ss:$0 sm:$0xff] }
   0xd   :  { %702 = vmatpush3.bf16.msk.msra.mxu0 %vm701_vm6, %v700_v30  ;;  %p734_p3 = por %p733_p2, %p732_p1 }
   0xe   :  { %703 = vmatprep.subr.bf16.mxu0 %v775_v3 }
   0xf   :  { %p735_p4 = pnand %p734_p3, %p728_p0 }
  0x7b   :  { %v298_v37 = vpop.permute.xlu0 %297 }
  0xde   :  { %v118_v14 = vpop.f32.mrb[0].mxu0 }
  0xdf   :  { %v119_v15 = vadd.f32 %v589_v13, %v118_v14  ;;  %v643_v16 = vpop.f32.mrb[1].mxu0 }
  0xe1   :  { %717 = vtanh.f32 %v119_v15 }
  0xeb   :  { %v718_v17 = vpop.eup %717 }
  0xec   :  { %651 = vmatmul.mubr.msk.f32.vlgmr.msra.gmra.mrb[0].mxu1 %vm130_vm3, %v718_v17 }
  0xed   :  { %659 = vmatprep.mubr.msk.f32.mxu1 %vm776_vm0, %v777_v6  ;;  %698 = vmatpush3.bf16.msra.mxu1 %v697_v20 }
  0xee   :  { %657 = vmatprep.subr.mxu1 %v777_v6 }
  0xf1   :  { %658 = vmatpush3.msk.msra.mxu1 %vm134_vm2, %v211_v21 }
  0xf2   :  { %706 = vmatprep.subr.bf16.mxu1 %v775_v3 }
 0x1bf   :  { %v204_v24 = vpop.f32.mrb[0].mxu1 }
 0x1c0   :  { %v205_v25 = vadd.f32 %v591_v23, %v204_v24  ;;  %v652_v26 = vpop.f32.mrb[1].mxu1 }
 0x1c2   :  { %719 = vtanh.f32 %v205_v25 }
 0x1cc   :  { %v720_v27 = vpop.eup %719 }
 0x1cd   :  { %660 = vmatmul.mubr.msk.f32.vlgmr.msra.gmra.mrb[2].mxu1 %vm130_vm3, %v720_v27 }
 0x1ce   :  { %684 = vmatprep.mubr.msk.f32.mxu1 %vm776_vm0, %v777_v6  ;;  %708 = vmatpush3.bf16.msra.mxu1 %v707_v53 }
 0x1cf   :  { %682 = vmatprep.subr.mxu1 %v777_v6 }
 0x1d2   :  { %683 = vmatpush3.msk.msra.mxu1 %vm134_vm2, %v478_v54 }
 0x2a0   :  { %v288_v32 = vpop.f32.mrb[2].mxu1 }
 0x2a1   :  { %v289_v33 = vadd.f32 %v594_v31, %v288_v32  ;;  %v661_v34 = vpop.f32.mrb[3].mxu1 }
 0x2a3   :  { %v292_v35 = vmul.f32 0.5, %v289_v33  ;;  %560 = vst.msk [vmem:[#allocation4] sm:$0xff] %vm130_vm3, %v289_v33 }
 0x2a5   :  { %v293_v36 = vmul.f32 1.442695, %v292_v35 }
 0x2a7   :  { %721 = vpow2.f32 %v293_v36 }
 0x2b1   :  { %v722_v38 = vpop.eup %721 }
 0x2b2   :  { %v300_v39 = vmul.f32 %v722_v38, %v298_v37 }
 0x2b4   :  { %302 = vrot.lane.b32.xlu0 %v300_v39, %s780_s5 }
 0x326   :  { %v303_v40 = vpop.permute.xlu0 %302 }
 0x327   :  { %v305_v41 = vadd.f32 %v303_v40, %v289_v33 }
 0x329   :  { %667 = vmatmul.mubr.msk.f32.vlgmr.msra.gmra.mrb[2].mxu0 %vm312_vm7, %v305_v41 }
 0x32a   :  { %675 = vmatprep.mubr.msk.f32.mxu0 %vm776_vm0, %v777_v6  ;;  %705 = vmatpush3.bf16.msra.mxu0 %v704_v44 }
 0x32b   :  { %673 = vmatprep.subr.mxu0 %v777_v6 }
 0x32e   :  { %674 = vmatpush3.msk.msra.mxu0 %vm134_vm2, %v602_v45 }
 0x3fc   :  { %v386_v47 = vpop.f32.mrb[2].mxu0 }
 0x3fd   :  { %v387_v48 = vadd.f32 %v597_v46, %v386_v47  ;;  %v668_v49 = vpop.f32.mrb[3].mxu0 }
 0x3ff   :  { %723 = vtanh.f32 %v387_v48 }
 0x409   :  { %v724_v50 = vpop.eup %723 }
 0x40a   :  { %676 = vmatmul.mubr.msk.f32.vlgmr.msra.gmra.mrb[4].mxu0 %vm130_vm3, %v724_v50 }
 0x4dd   :  { %v471_v56 = vpop.f32.mrb[4].mxu0 }
 0x4de   :  { %v472_v57 = vadd.f32 %v603_v55, %v471_v56  ;;  %v677_v58 = vpop.f32.mrb[5].mxu0 }
 0x4e0   :  { %725 = vtanh.f32 %v472_v57 }
 0x4ea   :  { %v726_v59 = vpop.eup %725 }
 0x4eb   :  { %685 = vmatmul.mubr.msk.f32.vlgmr.msra.gmra.mrb[4].mxu1 %vm130_vm3, %v726_v59 }
 0x4ec   :  { %738 = shalt.err (!%p735_p4)
}
 0x4ed   :  { %s739_s4 = scalar_lea.hbm %s978_s9, 128 }
 0x4ee   :  { %p740_p5 = scmp.ne.s32.totalorder %s978_s9, %s739_s4  ;;  %p743_p6 = scmp.lt.u32.totalorder %s739_s4, %s978_s9 }
 0x4f0   :  { %p745_p7 = pnand %p743_p6, %p740_p5 }
 0x4f2   :  { %748 = shalt.err (!%p745_p7)
}
 0x4f3   :  { %580 = dma.vmem_to_hbm [thread:$0]  %s578_s12, 128, %s978_s9, [#allocation5]   ;;  %v606_v60 = vld [vmem:[%s976_s7 + $0x5] ss:$0 sm:$0xff] }
 0x4f4   :  { %s782_s20 = smov [#allocation2]  }
 0x4f5   :  { %s567_s21 = sshll.u32 %s782_s20, 4  ;;  %s568_s21 = int_to_ptr.vmem [resolvable:$true] %s567_s21 }
 0x4f6   :  { %s749_s0 = scalar_lea.vmem %s568_s21, 128  ;;  %p754_p9 = scmp.lt.s32.totalorder %s568_s21, %s568_s21 }
 0x4f7   :  { %p750_p8 = scmp.ne.s32.totalorder %s568_s21, %s749_s0  ;;  %p755_p10 = scmp.lt.s32.totalorder %s749_s0, %s749_s0 }
 0x4f9   :  { %p756_p11 = por %p755_p10, %p754_p9 }
 0x4fb   :  { %p757_p12 = pnand %p756_p11, %p750_p8 }
 0x5be   :  { %v555_v61 = vpop.f32.mrb[4].mxu1 }
 0x5bf   :  { %v556_v62 = vadd.f32 %v606_v60, %v555_v61  ;;  %v686_v63 = vpop.f32.mrb[5].mxu1 }
 0x5c1   :  { %559 = vst.msk [vmem:[#allocation2] sm:$0xff] %vm48_vm1, %v556_v62 }
 0x5c2   :  { %760 = shalt.err (!%p757_p12)
}
 0x5c3   :  { %s761_s23 = scalar_lea.hbm %s977_s8, 128 }
 0x5c4   :  { %p762_p13 = scmp.ne.s32.totalorder %s977_s8, %s761_s23  ;;  %p765_p0 = scmp.lt.u32.totalorder %s761_s23, %s977_s8 }
 0x5c6   :  { %p767_p1 = pnand %p765_p0, %p762_p13 }
 0x5c8   :  { %770 = shalt.err (!%p767_p1)
}
 0x5c9   :  { %570 = dma.vmem_to_hbm [thread:$0]  %s568_s21, 128, %s977_s8, [#allocation3]  }
 0x5ca   :  { %771 = dma.done.wait [#allocation3], 128  }
 0x5cb   :  { %772 = vsyncadd [#allocation3], 4294967168 }
 0x5cc   :  { %773 = dma.done.wait [#allocation5], 128  }
 0x5cd   :  { %774 = vsyncadd [#allocation5], 4294967168 }
 0x5ce   :  { %587 = vsyncpa [#allocation3], 1 }
 0x5cf   :  { %588 = vsyncpa [#allocation5], 1 }

</bundles_post_ra>
